<compile_context>
chip_gen: v7x
topology: tpu7x:2x2x1
jax: 0.10.0
libtpu: 0.0.40
codegen_flags: <defaults>
</compile_context>

<pallas_src>
import jax
import jax.numpy as jnp
from jax.experimental import pallas as pl
from jax.experimental.pallas import tpu as pltpu

EPS = 1e-5


def _make_stage1_kernel(thw, tn):
    """conv_5 (BN-folded) + ReLU + mean over THW, tiled over (B, dim_inner, THW)."""
    inv_thw = 1.0 / float(thw)
    needs_mask = (thw % tn) != 0

    def kernel(x_ref, w5_ref, b5_ref, pooled_ref, acc_ref):
        k = pl.program_id(2)

        @pl.when(k == 0)
        def _init():
            acc_ref[...] = jnp.zeros_like(acc_ref)

        # In-kernel bf16 cast of the activation tile (single HBM read of f32 x).
        x = x_ref[0].astype(jnp.bfloat16)                               # [C_in, TN]
        # conv_5 folded with eval-mode BN scale: contract over C_in on the MXU.
        y = jnp.dot(w5_ref[...], x, preferred_element_type=jnp.float32)  # [TM, TN] f32
        # folded BN bias + ReLU (f32 elementwise)
        y = jnp.maximum(y + b5_ref[...], 0.0)

        if needs_mask:
            # Zero padded columns of the last THW tile before summing so the
            # spatiotemporal mean only sees real voxels.
            col = k * tn + jax.lax.broadcasted_iota(jnp.int32, (1, tn), 1)
            y = jnp.where(col < thw, y, 0.0)

        # Running sum over the THW reduction axis (lane-axis reduce, XLU slot).
        acc_ref[...] += jnp.sum(y, axis=-1, keepdims=True)              # [TM, 1]

        @pl.when(k == pl.num_programs(2) - 1)
        def _finalize():
            # mean = sum / true THW; one tiny transpose -> lane-dense [1, TM] store.
            pooled_ref[0] = jnp.transpose(acc_ref[...] * inv_thw)

    return kernel


def x3d_stage2_kernel(p_ref, wl_ref, wp_ref, bp_ref, out_ref):
    # p_ref: [B, dim_inner] f32 pooled features; batched tail (M = B).
    p = p_ref[...].astype(jnp.bfloat16)
    z = jnp.dot(p, wl_ref[...], preferred_element_type=jnp.float32)     # lin_5
    z = jnp.maximum(z, 0.0)                                             # lin_5 ReLU
    logits = jnp.dot(z.astype(jnp.bfloat16), wp_ref[...],
                     preferred_element_type=jnp.float32) + bp_ref[...]  # projection
    # eval path: softmax over classes (spatial mean over 1x1x1 is identity)
    m = jnp.max(logits, axis=-1, keepdims=True)
    e = jnp.exp(logits - m)
    inv = pl.reciprocal(jnp.sum(e, axis=-1, keepdims=True), approx=True)  # EUP slot
    out_ref[...] = (e * inv).astype(out_ref.dtype)


def x3d_head_forward(x_ncthw, params, *, tm=1024, tn=512):
    """x_ncthw: [B, C_in, T, H, W] float32. Returns softmax probs [B, num_classes].

    tm / tn are the dim_inner / THW tile sizes (clamped to full extent when the
    dim is small). Suggested: tn=512 on v7x (64 MiB VMEM), 1024-2048 on v5e/v6e.
    """
    B, C_in, T, H, W = x_ncthw.shape
    THW = T * H * W
    dim_inner = params["conv5_w"].shape[0]
    dim_out = params["lin5_w"].shape[0]
    num_classes = params["proj_w"].shape[0]

    # Clamp tiles: use the full extent when small; otherwise tiles must be
    # lane-aligned (multiple of 128) to satisfy the (8,128) block constraint.
    tn = THW if THW <= tn else tn
    tm = dim_inner if dim_inner <= tm else tm
    if THW > tn:
        assert tn % 128 == 0, "tn must be a multiple of 128 when THW is tiled"
    if dim_inner > tm:
        assert tm % 128 == 0, "tm must be a multiple of 128 when dim_inner is tiled"
    n_m = pl.cdiv(dim_inner, tm)
    n_k = pl.cdiv(THW, tn)

    # Native-layout flattening only (free reshape); NO host-side dtype cast of x.
    x = x_ncthw.reshape(B, C_in, THW)

    # Fold eval-mode BatchNorm into conv_5 (one-time, weights only, f32 math).
    scale = params["bn_gamma"] * jax.lax.rsqrt(params["bn_var"] + EPS)            # [dim_inner]
    w5f = (params["conv5_w"] * scale[:, None]).astype(jnp.bfloat16)               # [dim_inner, C_in]
    b5f = (params["bn_beta"] - params["bn_mean"] * scale).reshape(dim_inner, 1)   # f32 column

    # Single-buffer the weight/bias tiles only when their block index never
    # changes (no pipelining benefit from double-buffering a constant block).
    const_w = dict(pipeline_mode=pl.Buffered(buffer_count=1)) if n_m == 1 else {}

    ce1 = pl.CostEstimate(
        flops=2 * B * THW * C_in * dim_inner,
        transcendentals=0,
        bytes_accessed=(n_m * B * C_in * THW * 4 + dim_inner * C_in * 2
                        + dim_inner * 4 + B * dim_inner * 4))

    # Stage 1: conv_5 + folded-BN + ReLU + spatiotemporal mean, tiled over
    # (batch, dim_inner rows, THW reduction).
    pooled = pl.pallas_call(
        _make_stage1_kernel(THW, tn),
        out_shape=jax.ShapeDtypeStruct((B, 1, dim_inner), jnp.float32),
        grid_spec=pltpu.PrefetchScalarGridSpec(
            num_scalar_prefetch=0,
            grid=(B, n_m, n_k),
            in_specs=[
                pl.BlockSpec((1, C_in, tn), lambda b, m, k: (b, 0, k)),
                pl.BlockSpec((tm, C_in), lambda b, m, k: (m, 0), **const_w),
                pl.BlockSpec((tm, 1), lambda b, m, k: (m, 0), **const_w),
            ],
            out_specs=pl.BlockSpec((1, 1, tm), lambda b, m, k: (b, 0, m)),
            scratch_shapes=[pltpu.VMEM((tm, 1), jnp.float32)],
        ),
        compiler_params=pltpu.CompilerParams(
            dimension_semantics=("parallel", "parallel", "arbitrary"),
            vmem_limit_bytes=48 * 1024 * 1024),
        cost_estimate=ce1,
    )(x, w5f, b5f)

    # Stage 2: lin_5 + projection + softmax, batched over the full batch at once.
    p = pooled.reshape(B, dim_inner)                         # free reshape, f32
    wl = params["lin5_w"].T.astype(jnp.bfloat16)             # [dim_inner, dim_out]
    wp = params["proj_w"].T.astype(jnp.bfloat16)             # [dim_out, num_classes]
    bp = params["proj_b"].reshape(1, num_classes)            # f32

    ce2 = pl.CostEstimate(
        flops=2 * B * (dim_inner * dim_out + dim_out * num_classes),
        transcendentals=B * num_classes,
        bytes_accessed=(B * dim_inner * 4 + dim_inner * dim_out * 2
                        + dim_out * num_classes * 2 + num_classes * 4
                        + B * num_classes * 4))

    out = pl.pallas_call(
        x3d_stage2_kernel,
        out_shape=jax.ShapeDtypeStruct((B, num_classes), jnp.float32),
        cost_estimate=ce2,
    )(p, wl, wp, bp)
    return out


def reference_forward(x_ncthw, params):
    """Pure-JAX f32 reference of the same eval-mode forward pass."""
    B, C_in, T, H, W = x_ncthw.shape
    xr = x_ncthw.reshape(B, C_in, T * H * W)
    y = jnp.einsum("oc,bct->bot", params["conv5_w"], xr)               # conv_5
    scale = params["bn_gamma"] * jax.lax.rsqrt(params["bn_var"] + EPS)
    y = (y - params["bn_mean"][None, :, None]) * scale[None, :, None] \
        + params["bn_beta"][None, :, None]                             # BN (eval)
    y = jnp.maximum(y, 0.0)                                            # ReLU
    pooled = jnp.mean(y, axis=-1)                                      # avg pool THW
    z = jnp.maximum(pooled @ params["lin5_w"].T, 0.0)                  # lin_5 + ReLU
    logits = z @ params["proj_w"].T + params["proj_b"]                 # projection
    return jax.nn.softmax(logits, axis=-1)


if __name__ == "__main__":
    # Small deterministic shapes consistent with the module
    # (pool_size = [T, H, W]: full-extent spatiotemporal pooling, typical X3D).
    # THW = 192 (not a multiple of 128) so the masked-tail path is exercised.
    B, C_in, T, H, W = 2, 24, 4, 6, 8
    dim_inner, dim_out, num_classes = 256, 64, 16

    key = jax.random.PRNGKey(0)
    ks = jax.random.split(key, 8)
    x = jax.random.normal(ks[0], (B, C_in, T, H, W), dtype=jnp.float32)

    params = {
        # PyTorch-natural layouts: conv weights [out, in], linear weight [out, in].
        "conv5_w": jax.random.normal(ks[1], (dim_inner, C_in), jnp.float32) * 0.1,
        "bn_gamma": jnp.ones((dim_inner,), jnp.float32),
        "bn_beta": jnp.zeros((dim_inner,), jnp.float32),
        "bn_mean": jax.random.normal(ks[2], (dim_inner,), jnp.float32) * 0.05,
        "bn_var": jnp.ones((dim_inner,), jnp.float32)
                  + 0.1 * jax.random.uniform(ks[3], (dim_inner,), jnp.float32),
        "lin5_w": jax.random.normal(ks[4], (dim_out, dim_inner), jnp.float32) * 0.1,
        "proj_w": jax.random.normal(ks[5], (num_classes, dim_out), jnp.float32) * 0.1,
        "proj_b": jax.random.normal(ks[6], (num_classes,), jnp.float32) * 0.1,
    }

    ref = reference_forward(x, params)

    # Path 1: default tile sizes -> full-extent blocks (n_m = n_k = 1),
    #         exercises the Buffered(1) constant-weight path.
    out_full = jax.block_until_ready(x3d_head_forward(x, params))
    # Path 2: forced small tiles -> exercises THW reduction tiling with a masked
    #         tail and the dim_inner parallel axis (n_m = n_k = 2).
    out_tiled = jax.block_until_ready(x3d_head_forward(x, params, tm=128, tn=128))

    for out in (out_full, out_tiled):
        assert out.shape == (B, num_classes)
        # bf16 MXU inputs (f32 accumulation) + approx softmax reciprocal loosen
        # the tolerance vs the pure-f32 reference.
        assert jnp.allclose(out, ref, atol=5e-3, rtol=2e-2), (
            f"mismatch: max abs diff {jnp.max(jnp.abs(out - ref))}")

    # TODO(synk): PGT caching branch, dropout, and BN running-stat updates are
    # training/streaming-only paths and are not exercised in this eval-mode kernel.
    print("KERNEL_OK")
</pallas_src>

<mosaic_0001>
module attributes {stable_mosaic.version = 11 : i64} {
  func.func @kernel(%arg0: i32, %arg1: i32, %arg2: i32, %arg3: memref<1x24x192xf32, #tpu.memory_space<vmem>>, %arg4: memref<256x24xbf16, #tpu.memory_space<vmem>>, %arg5: memref<256x1xf32, #tpu.memory_space<vmem>>, %arg6: memref<1x1x256xf32, #tpu.memory_space<vmem>>, %arg7: memref<256x1xf32, #tpu.memory_space<vmem>>) attributes {dimension_semantics = [#tpu.dimension_semantics<parallel>, #tpu.dimension_semantics<parallel>, #tpu.dimension_semantics<arbitrary>], iteration_bounds = array<i64: 2, 1, 1>, scalar_prefetch = 0 : i64, scratch_operands = 1 : i64, tpu.core_type = #tpu.core_type<tc>, window_params = [{transform_indices = @transform_0, window_bounds = array<i64: 1, 24, 192>}, {pipeline_mode = #tpu.pipeline_mode<synchronous>, transform_indices = @transform_1, window_bounds = array<i64: 256, 24>}, {pipeline_mode = #tpu.pipeline_mode<synchronous>, transform_indices = @transform_2, window_bounds = array<i64: 256, 1>}, {transform_indices = @transform_3, window_bounds = array<i64: 1, 1, 256>}]} {
    %c0_i32 = arith.constant 0 : i32
    %0 = arith.cmpi eq, %arg2, %c0_i32 : i32
    %1 = arith.extui %0 : i1 to i32
    %c0_i32_0 = arith.constant 0 : i32
    %2 = arith.cmpi ne, %1, %c0_i32_0 : i32
    scf.if %2 {
      %cst_15 = arith.constant 0.000000e+00 : f32
      %21 = vector.broadcast %cst_15 : f32 to vector<256x1xf32>
      %c0_16 = arith.constant 0 : index
      %c0_17 = arith.constant 0 : index
      %22 = vector.load %arg7[%c0_16, %c0_17] : memref<256x1xf32, #tpu.memory_space<vmem>>, vector<256x1xf32>
      tpu.vector_store %arg7[%c0_16, %c0_17], %21 {strides = array<i32>} : memref<256x1xf32, #tpu.memory_space<vmem>>, vector<256x1xf32>,
    } else {
    }
    %c0 = arith.constant 0 : index
    %c0_1 = arith.constant 0 : index
    %c0_2 = arith.constant 0 : index
    %3 = vector.load %arg3[%c0, %c0_1, %c0_2] : memref<1x24x192xf32, #tpu.memory_space<vmem>>, vector<1x24x192xf32>
    %4 = vector.shape_cast %3 : vector<1x24x192xf32> to vector<24x192xf32>
    %5 = arith.truncf %4 : vector<24x192xf32> to vector<24x192xbf16>
    %c0_3 = arith.constant 0 : index
    %c0_4 = arith.constant 0 : index
    %6 = vector.load %arg4[%c0_3, %c0_4] : memref<256x24xbf16, #tpu.memory_space<vmem>>, vector<256x24xbf16>
    %cst = arith.constant dense<0.000000e+00> : vector<256x192xf32>
    %7 = tpu.matmul %6, %5, %cst {dimension_numbers = #tpu.dot_dimension_numbers<[1], [0], [0], [1], [0, 0, 1, 1], [], []>} : vector<256x24xbf16>, vector<24x192xbf16>, vector<256x192xf32> -> vector<256x192xf32>
    %c0_5 = arith.constant 0 : index
    %c0_6 = arith.constant 0 : index
    %8 = vector.load %arg5[%c0_5, %c0_6] : memref<256x1xf32, #tpu.memory_space<vmem>>, vector<256x1xf32>
    %9 = vector.broadcast %8 : vector<256x1xf32> to vector<256x192xf32>
    %10 = arith.addf %7, %9 : vector<256x192xf32>
    %cst_7 = arith.constant 0.000000e+00 : f32
    %11 = vector.broadcast %cst_7 : f32 to vector<256x192xf32>
    %12 = arith.maximumf %10, %11 : vector<256x192xf32>
    %c0_8 = arith.constant 0 : index
    %c0_9 = arith.constant 0 : index
    %13 = vector.load %arg7[%c0_8, %c0_9] : memref<256x1xf32, #tpu.memory_space<vmem>>, vector<256x1xf32>
    %cst_10 = arith.constant dense<0.000000e+00> : vector<256xf32>
    %14 = vector.multi_reduction <add>, %12, %cst_10 [1] : vector<256x192xf32> to vector<256xf32>
    %15 = vector.shape_cast %14 : vector<256xf32> to vector<256x1xf32>
    %16 = arith.addf %13, %15 : vector<256x1xf32>
    %c0_11 = arith.constant 0 : index
    %c0_12 = arith.constant 0 : index
    %17 = vector.load %arg7[%c0_11, %c0_12] : memref<256x1xf32, #tpu.memory_space<vmem>>, vector<256x1xf32>
    tpu.vector_store %arg7[%c0_11, %c0_12], %16 {strides = array<i32>} : memref<256x1xf32, #tpu.memory_space<vmem>>, vector<256x1xf32>,
    %c0_i32_13 = arith.constant 0 : i32
    %18 = arith.cmpi eq, %arg2, %c0_i32_13 : i32
    %19 = arith.extui %18 : i1 to i32
    %c0_i32_14 = arith.constant 0 : i32
    %20 = arith.cmpi ne, %19, %c0_i32_14 : i32
    scf.if %20 {
      %c0_15 = arith.constant 0 : index
      %c0_16 = arith.constant 0 : index
      %21 = vector.load %arg7[%c0_15, %c0_16] : memref<256x1xf32, #tpu.memory_space<vmem>>, vector<256x1xf32>
      %cst_17 = arith.constant 0.00520833349 : f32
      %22 = vector.broadcast %cst_17 : f32 to vector<256x1xf32>
      %23 = arith.mulf %21, %22 : vector<256x1xf32>
      %24 = tpu.transpose %23, [1, 0] : vector<256x1xf32> -> vector<1x256xf32>
      %c0_18 = arith.constant 0 : index
      %c0_19 = arith.constant 0 : index
      %c0_20 = arith.constant 0 : index
      %25 = vector.load %arg6[%c0_18, %c0_19, %c0_20] : memref<1x1x256xf32, #tpu.memory_space<vmem>>, vector<1x1x256xf32>
      %26 = vector.shape_cast %25 : vector<1x1x256xf32> to vector<1x256xf32>
      %27 = vector.shape_cast %24 : vector<1x256xf32> to vector<1x1x256xf32>
      tpu.vector_store %arg6[%c0_18, %c0_19, %c0_20], %27 {strides = array<i32>} : memref<1x1x256xf32, #tpu.memory_space<vmem>>, vector<1x1x256xf32>,
    } else {
    }
    return
  }
  func.func @transform_0(%arg0: i32, %arg1: i32, %arg2: i32) -> (i32, i32, i32) {
    %c0_i32 = arith.constant 0 : i32
    %c0_i32_0 = arith.constant 0 : i32
    return %arg0, %c0_i32, %arg2 : i32, i32, i32
  }
  func.func @transform_1(%arg0: i32, %arg1: i32, %arg2: i32) -> (i32, i32) {
    %c0_i32 = arith.constant 0 : i32
    %c0_i32_0 = arith.constant 0 : i32
    return %arg1, %c0_i32 : i32, i32
  }
  func.func @transform_2(%arg0: i32, %arg1: i32, %arg2: i32) -> (i32, i32) {
    %c0_i32 = arith.constant 0 : i32
    %c0_i32_0 = arith.constant 0 : i32
    return %arg1, %c0_i32 : i32, i32
  }
  func.func @transform_3(%arg0: i32, %arg1: i32, %arg2: i32) -> (i32, i32, i32) {
    %c0_i32 = arith.constant 0 : i32
    %c0_i32_0 = arith.constant 0 : i32
    return %arg0, %c0_i32, %arg1 : i32, i32, i32
  }
}

</mosaic_0001>

<bundles_post_ra>
// kernel: tpu_custom_call.1
= control target key start
LH: loop header
LB: loop body
LE: loop exit
PB: predicated region body
PF: predicated region fallthrough
CT: control target
= control target key end

     0   :  { %8 = vsyncpa [#allocation4], 0  ;;  %s2093_s0 = inlined_call_operand.vmem [shape: f32[2,24,192], index: 0, kind: input, shape index: {}]   ;;  %s2094_s1 = inlined_call_operand.vmem [shape: bf16[256,24], index: 1, kind: input, shape index: {}]   ;;  %s2095_s2 = inlined_call_operand.vmem [shape: f32[256,1], index: 2, kind: input, shape index: {}]   ;;  %s2096_s3 = inlined_call_operand.hbm [shape: f32[2,1,256], index: 3, kind: output, shape index: {}]  }
   0x1   :  { %10 = vsyncpa [#allocation4 + $0x1], 0  ;;  %s1655_s12 = smov 0   ;;  %s1657_s13 = smov 0  }
   0x2   :  { %s1659_s14 = smov 0   ;;  %s1661_s15 = smov 0  }
   0x3   :  { %s1663_s16 = smov 0   ;;  %s1665_s17 = smov 0  }
   0x4 LB: > { %s1422_s18 = sadd.s32 4294967295, %s1629_s17   ;;  %s1423_s19 = sadd.s32 4294967294, %s1629_s17   ;;  %s1629_s17 = sphi %s1665_s17, %s16_s17   ;;  %s1625_s16 = sphi %s1663_s16, %s2103_s16   ;;  %s1621_s15 = sphi %s1661_s15, %s2102_s15   ;;  %s1617_s14 = sphi %s1659_s14, %s2101_s14   ;;  %s1613_s13 = sphi %s1657_s13, %s2100_s13   ;;  %s1609_s12 = sphi %s1655_s12, %s2099_s12  }
   0x5   : > { %s35_s20 = sadd.s32 1, %s1625_s16  ;;  %s124_s21 = sadd.s32 1, %s1617_s14 }
   0x6   : > { %p37_p0 = scmp.ge.s32.totalorder %s35_s20, 2  ;;  %p134_p1 = scmp.ne.s32.totalorder %s1617_s14, %s1613_s13 }
   0x7   : > { %p135_p2 = scmp.eq.s32.totalorder %s1422_s18, 1  ;;  %p140_p3 = scmp.ne.s32.totalorder %s1613_s13, %s1609_s12 }
   0x8   : > { %s2105_s20 = smov (%p37_p0, %s35_s20), 0  ;;  %p141_p5 = scmp.eq.s32.totalorder %s1423_s19, 1 }
   0x9   : > { %p1695_p4 = por %p135_p2, %p134_p1  ;;  %s119_s23 = ssub.s32 %s1625_s16, %s2105_s20 }
   0xa   : > { %p1428_p6 = scmp.ge.s32.totalorder %s1629_s17, 1  ;;  %p122_p7 = scmp.eq.s32.totalorder %s119_s23, 0 }
   0xb   : > { %p1702_p8 = por %p141_p5, %p140_p3  ;;  %p190_p9 = scmp.lt.s32.totalorder %s1629_s17, 3 }
   0xc   : > { %s1708_s25 = scalar_select %p122_p7, %s1617_s14, %s124_s21  }
   0xd   : > { %p191_p10 = pnand %p1428_p6, %p190_p9 }
   0xe   : > { %p229_p11 = scmp.lt.s32.totalorder (!%p191_p10), %s1621_s15, 1  ;;  %v331_v0 = vld [vmem:[%s2095_s2] sm:$0xff] (!%p191_p10)  ;;  %v1631_v1 = vmov (!%p191_p10), 0   ;;  %v333_v2 = vld [vmem:[%s2095_s2 + $0x10] sm:$0xff] (!%p191_p10)  ;;  %v332_v3 = vld [vmem:[%s2095_s2 + $0x8] sm:$0xff] (!%p191_p10)  ;;  %vm652_vm0 = vcmask (!%p191_p10), 1043456  }
   0xf   : > { %194 = sbr.rel (%p191_p10) target bundleno = 565 (0x235), region = 32  ;;  %1533 = vset.pattern.permute.xlu0 (!%p191_p10), %v1631_v1  ;;  %691 = vmatprep.mubr.bf16.mxu0 (!%p191_p10), %v1631_v1  ;;  %v334_v4 = vld [vmem:[%s2095_s2 + $0x18] sm:$0xff] (!%p191_p10)  ;;  %v335_v15 = vld [vmem:[%s2095_s2 + $0x20] sm:$0xff] (!%p191_p10)  ;;  %v336_v16 = vld [vmem:[%s2095_s2 + $0x28] sm:$0xff] (!%p191_p10)  ;;  %vm603_vm1 = vcmask (!%p191_p10), 195584   ;;  %vm256_vm2 = vcmask (!%p191_p10), 7168  }
  0x10   : > { %365 = vperm.xlu0 (!%p191_p10), %1533, %v331_v0   ;;  %771 = vmatprep.mubr.bf16.mxu1 (!%p191_p10), %v1631_v1  ;;  %v1535_v18 = vld [vmem:[%s2094_s1] sm:$0xff] (!%p191_p10)   ;;  %v337_v20 = vld [vmem:[%s2095_s2 + $0x30] sm:$0xff] (!%p191_p10)  ;;  %v338_v21 = vld [vmem:[%s2095_s2 + $0x38] sm:$0xff] (!%p191_p10)  ;;  %v1632_v60 = vmov (!%p191_p10), 0.0   ;;  %vm948_vm3 = vcmask (!%p191_p10), 523264   ;;  %s225_s23 = sand.u32 (!%p191_p10), 1, %s1613_s13  }
  0x11   : > { %1534 = vset.pattern.permute.xlu1 (!%p191_p10), %v1631_v1  ;;  %v1536_v19 = vld [vmem:[%s2094_s1 + $0x40] sm:$0xff] (!%p191_p10)   ;;  %v340_v23 = vld [vmem:[%s2095_s2 + $0x48] sm:$0xff] (!%p191_p10)  ;;  %v341_v26 = vld [vmem:[%s2095_s2 + $0x50] sm:$0xff] (!%p191_p10)  ;;  %273 = vst.msk [vmem:[#allocation2 + $0x80] sm:$0xff] (!%p191_p10), %vm256_vm2, %v1632_v60  ;;  %s1429_s26 = sshll.u32 (!%p191_p10), %s225_s23, 1  ;;  %s1469_s27 = sshll.u32 (!%p191_p10), %s1621_s15, 5 }
  0x12   : > { %375 = vperm.xlu1 (!%p191_p10), %1534, %v333_v2   ;;  %v339_v22 = vld [vmem:[%s2095_s2 + $0x40] sm:$0xff] (!%p191_p10)  ;;  %v1537_v24 = vld [vmem:[%s2094_s1 + $0x8] sm:$0xff] (!%p191_p10)   ;;  %v342_v27 = vld [vmem:[%s2095_s2 + $0x58] sm:$0xff] (!%p191_p10)  ;;  %257 = vst.msk [vmem:[#allocation2] sm:$0xff] (!%p191_p10), %vm256_vm2, %v1632_v60  ;;  %s2046_s5 = scalar_lea.hbm (!%p191_p10), %s2096_s3, %s1469_s27 }
  0x13   : > { %v1538_v25 = vld [vmem:[%s2094_s1 + $0x48] sm:$0xff] (!%p191_p10)   ;;  %v343_v28 = vld [vmem:[%s2095_s2 + $0x60] sm:$0xff] (!%p191_p10)  ;;  %v1539_v30 = vld [vmem:[%s2094_s1 + $0x10] sm:$0xff] (!%p191_p10)   ;;  %258 = vst.msk [vmem:[#allocation2 + $0x8] sm:$0xff] (!%p191_p10), %vm256_vm2, %v1632_v60 }
  0x14   : > { %370 = vperm.xlu0 (!%p191_p10), %1533, %v332_v3   ;;  %v344_v29 = vld [vmem:[%s2095_s2 + $0x68] sm:$0xff] (!%p191_p10)  ;;  %v1540_v31 = vld [vmem:[%s2094_s1 + $0x50] sm:$0xff] (!%p191_p10)   ;;  %v346_v33 = vld [vmem:[%s2095_s2 + $0x78] sm:$0xff] (!%p191_p10)  ;;  %259 = vst.msk [vmem:[#allocation2 + $0x10] sm:$0xff] (!%p191_p10), %vm256_vm2, %v1632_v60 }
  0x15   : > { %v345_v32 = vld [vmem:[%s2095_s2 + $0x70] sm:$0xff] (!%p191_p10)  ;;  %v347_v34 = vld [vmem:[%s2095_s2 + $0x80] sm:$0xff] (!%p191_p10)  ;;  %v348_v35 = vld [vmem:[%s2095_s2 + $0x88] sm:$0xff] (!%p191_p10)  ;;  %260 = vst.msk [vmem:[#allocation2 + $0x18] sm:$0xff] (!%p191_p10), %vm256_vm2, %v1632_v60 }
  0x16   : > { %s230_s28 = scalar_select %p229_p11, %s1621_s15, 1  ;;  %380 = vperm.xlu1 %1534, %v334_v4   ;;  %v1541_v36 = vld [vmem:[%s2094_s1 + $0x18] sm:$0xff]   ;;  %v349_v38 = vld [vmem:[%s2095_s2 + $0x90] sm:$0xff]  ;;  %v351_v40 = vld [vmem:[%s2095_s2 + $0xa0] sm:$0xff]  ;;  %261 = vst.msk [vmem:[#allocation2 + $0x20] sm:$0xff] %vm256_vm2, %v1632_v60 }
  0x17   : > { %v1542_v37 = vld [vmem:[%s2094_s1 + $0x58] sm:$0xff]   ;;  %v352_v41 = vld [vmem:[%s2095_s2 + $0xa8] sm:$0xff]  ;;  %v1543_v42 = vld [vmem:[%s2094_s1 + $0x20] sm:$0xff]   ;;  %262 = vst.msk [vmem:[#allocation2 + $0x28] sm:$0xff] %vm256_vm2, %v1632_v60  ;;  %s1634_s15 = smov [#allocation3]  }
  0x18   : > { %s1474_s6 = smul.u32 48, %s230_s28  ;;  %385 = vperm.xlu0 %1533, %v335_v15   ;;  %v350_v39 = vld [vmem:[%s2095_s2 + $0x98] sm:$0xff]  ;;  %v1544_v43 = vld [vmem:[%s2094_s1 + $0x60] sm:$0xff]   ;;  %v353_v44 = vld [vmem:[%s2095_s2 + $0xb0] sm:$0xff]  ;;  %263 = vst.msk [vmem:[#allocation2 + $0x30] sm:$0xff] %vm256_vm2, %v1632_v60  ;;  %s227_s28 = scalar_lea.vmem [#allocation3], %s1429_s26 }
  0x19   : > { %v354_v45 = vld [vmem:[%s2095_s2 + $0xb8] sm:$0xff]  ;;  %v355_v46 = vld [vmem:[%s2095_s2 + $0xc0] sm:$0xff]  ;;  %v356_v47 = vld [vmem:[%s2095_s2 + $0xc8] sm:$0xff]  ;;  %264 = vst.msk [vmem:[#allocation2 + $0x38] sm:$0xff] %vm256_vm2, %v1632_v60  ;;  %s1313_s29 = sshll.u32 %s227_s28, 4  ;;  %s1555_s8 = sshll.u32 %s1634_s15, 4  ;;  %s2048_s29 = int_to_ptr.vmem [resolvable:$true] %s1313_s29  ;;  %s1556_s8 = int_to_ptr.vmem [resolvable:$false] %s1555_s8 }
  0x1a   : > { %s236_s11 = scalar_lea.vmem %s2093_s0, %s1474_s6  ;;  %390 = vperm.xlu1 %1534, %v336_v16   ;;  %v1545_v48 = vld [vmem:[%s2094_s1 + $0x28] sm:$0xff]   ;;  %v357_v50 = vld [vmem:[%s2095_s2 + $0xd0] sm:$0xff]  ;;  %v358_v51 = vld [vmem:[%s2095_s2 + $0xd8] sm:$0xff]  ;;  %265 = vst.msk [vmem:[#allocation2 + $0x40] sm:$0xff] %vm256_vm2, %v1632_v60  ;;  %s1297_s6 = scalar_lea.sflag [#allocation4], %s225_s23 }
  0x1b   : > { %v290_v5 = vld [vmem:[%s236_s11 + $0x8] sm:$0xff]  ;;  %v292_v6 = vld [vmem:[%s236_s11 + $0x18] sm:$0xff]  ;;  %v289_v7 = vld [vmem:[%s236_s11] sm:$0xff]  ;;  %266 = vst.msk [vmem:[#allocation2 + $0x48] sm:$0xff] %vm256_vm2, %v1632_v60  ;;  %s1551_s7 = scalar_lea.vmem %s2048_s29, 32  ;;  %s1557_s9 = scalar_lea.vmem %s1556_s8, 64 }
  0x1c   : > { %v296_v8 = vpack.c.bf16 %v292_v6, %v290_v5  ;;  %v291_v9 = vld [vmem:[%s236_s11 + $0x10] sm:$0xff]  ;;  %v294_v10 = vld [vmem:[%s236_s11 + $0x28] sm:$0xff]  ;;  %v293_v11 = vld [vmem:[%s236_s11 + $0x20] sm:$0xff]  ;;  %395 = vperm.xlu0 %1533, %v337_v20   ;;  %267 = vst.msk [vmem:[#allocation2 + $0x50] sm:$0xff] %vm256_vm2, %v1632_v60  ;;  %p1552_p12 = scmp.ne.s32.totalorder %s2048_s29, %s1551_s7  ;;  %p1558_p1 = scmp.lt.s32.totalorder %s2048_s29, %s1556_s8 }
  0x1d   : > { %v295_v12 = vpack.c.bf16 %v291_v9, %v289_v7  ;;  %v298_v13 = vpack.c.bf16 %v294_v10, %v294_v10  ;;  %v297_v14 = vpack.c.bf16 %v293_v11, %v293_v11  ;;  %v1546_v49 = vld [vmem:[%s2094_s1 + $0x68] sm:$0xff]   ;;  %v359_v52 = vld [vmem:[%s2095_s2 + $0xe0] sm:$0xff]  ;;  %v1547_v54 = vld [vmem:[%s2094_s1 + $0x30] sm:$0xff]   ;;  %268 = vst.msk [vmem:[#allocation2 + $0x58] sm:$0xff] %vm256_vm2, %v1632_v60  ;;  %p1559_p2 = scmp.lt.s32.totalorder %s1557_s9, %s1551_s7 }
  0x1e   : > { %659 = vmatprep.subr.bf16.mxu0 %v296_v8  ;;  %1470 = vmatprep.subr.bf16.mxu1 %v296_v8  ;;  %v360_v53 = vld [vmem:[%s2095_s2 + $0xe8] sm:$0xff]  ;;  %v1548_v55 = vld [vmem:[%s2094_s1 + $0x70] sm:$0xff]   ;;  %v362_v57 = vld [vmem:[%s2095_s2 + $0xf8] sm:$0xff]  ;;  %269 = vst.msk [vmem:[#allocation2 + $0x60] sm:$0xff] %vm256_vm2, %v1632_v60  ;;  %p1553_p13 = pnand %p1552_p12, %p1695_p4 }
  0x1f   : > { %660 = vmatpush1.bf16.msra.mxu0 %v295_v12  ;;  %1472 = vmatpush1.bf16.msra.mxu1 %v295_v12  ;;  %v654_v17 = vsel %vm652_vm0, %v297_v14, 0  ;;  %v361_v56 = vld [vmem:[%s2095_s2 + $0xf0] sm:$0xff]  ;;  %v1549_v58 = vld [vmem:[%s2094_s1 + $0x38] sm:$0xff]   ;;  %270 = vst.msk [vmem:[#allocation2 + $0x68] sm:$0xff] %vm256_vm2, %v1632_v60  ;;  %271 = vst.msk [vmem:[#allocation2 + $0x70] sm:$0xff] %vm256_vm2, %v1632_v60  ;;  %p1560_p3 = por %p1559_p2, %p1558_p1 }
  0x20   : > { %1447 = vmatprep.subr.msk.bf16.mxu0 %vm652_vm0, %v298_v13  ;;  %1471 = vmatprep.subr.msk.bf16.mxu1 %vm652_vm0, %v298_v13  ;;  %v1550_v59 = vld [vmem:[%s2094_s1 + $0x78] sm:$0xff]   ;;  %272 = vst.msk [vmem:[#allocation2 + $0x78] sm:$0xff] %vm256_vm2, %v1632_v60  ;;  %274 = vst.msk [vmem:[#allocation2 + $0x88] sm:$0xff] %vm256_vm2, %v1632_v60  ;;  %p1554_p0 = pneg %p1553_p13 }
  0x21   : > { %400 = vperm.xlu1 %1534, %v338_v21   ;;  %405 = vperm.xlu0 %1533, %v339_v22   ;;  %275 = vst.msk [vmem:[#allocation2 + $0x90] sm:$0xff] %vm256_vm2, %v1632_v60  ;;  %276 = vst.msk [vmem:[#allocation2 + $0x98] sm:$0xff] %vm256_vm2, %v1632_v60 }
  0x22   : > { %277 = vst.msk [vmem:[#allocation2 + $0xa0] sm:$0xff] %vm256_vm2, %v1632_v60  ;;  %278 = vst.msk [vmem:[#allocation2 + $0xa8] sm:$0xff] %vm256_vm2, %v1632_v60  ;;  %p1561_p5 = pnand %p1560_p3, %p1554_p0 }
  0x23   : > { %662 = vmatpush1.bf16.msra.mxu0 %v654_v17  ;;  %1473 = vmatpush1.bf16.msra.mxu1 %v654_v17  ;;  %279 = vst.msk [vmem:[#allocation2 + $0xb0] sm:$0xff] %vm256_vm2, %v1632_v60  ;;  %280 = vst.msk [vmem:[#allocation2 + $0xb8] sm:$0xff] %vm256_vm2, %v1632_v60 }
  0x24   : > { %281 = vst.msk [vmem:[#allocation2 + $0xc0] sm:$0xff] %vm256_vm2, %v1632_v60  ;;  %282 = vst.msk [vmem:[#allocation2 + $0xc8] sm:$0xff] %vm256_vm2, %v1632_v60 }
  0x25   : > { %410 = vperm.xlu1 %1534, %v340_v23   ;;  %415 = vperm.xlu0 %1533, %v341_v26   ;;  %283 = vst.msk [vmem:[#allocation2 + $0xd0] sm:$0xff] %vm256_vm2, %v1632_v60  ;;  %284 = vst.msk [vmem:[#allocation2 + $0xd8] sm:$0xff] %vm256_vm2, %v1632_v60 }
  0x26   : > { %1448 = vmatmul.mubr.msk.bf16.vlgmr.msra.gmra.mrb[0].mxu0 %vm603_vm1, %v1535_v18  ;;  %1456 = vmatmul.mubr.msk.bf16.vlgmr.msra.gmra.mrb[0].mxu1 %vm603_vm1, %v1536_v19  ;;  %285 = vst.msk [vmem:[#allocation2 + $0xe0] sm:$0xff] %vm256_vm2, %v1632_v60  ;;  %286 = vst.msk [vmem:[#allocation2 + $0xe8] sm:$0xff] %vm256_vm2, %v1632_v60 }
  0x27   : > { %701 = vmatprep.mubr.bf16.mxu0 %v1631_v1  ;;  %781 = vmatprep.mubr.bf16.mxu1 %v1631_v1  ;;  %287 = vst.msk [vmem:[#allocation2 + $0xf0] sm:$0xff] %vm256_vm2, %v1632_v60  ;;  %288 = vst.msk [vmem:[#allocation2 + $0xf8] sm:$0xff] %vm256_vm2, %v1632_v60 }
  0x29   : > { %420 = vperm.xlu1 %1534, %v342_v27   ;;  %425 = vperm.xlu0 %1533, %v343_v28  }
  0x2d   : > { %430 = vperm.xlu1 %1534, %v344_v29   ;;  %435 = vperm.xlu0 %1533, %v345_v32  }
  0x2e   : > { %1449 = vmatmul.mubr.msk.bf16.gmra.mrb[4].mxu0 %vm603_vm1, %v1537_v24  ;;  %1457 = vmatmul.mubr.msk.bf16.gmra.mrb[4].mxu1 %vm603_vm1, %v1538_v25 }
  0x2f   : > { %711 = vmatprep.mubr.bf16.mxu0 %v1631_v1  ;;  %791 = vmatprep.mubr.bf16.mxu1 %v1631_v1 }
  0x31   : > { %440 = vperm.xlu1 %1534, %v346_v33   ;;  %445 = vperm.xlu0 %1533, %v347_v34  }
  0x35   : > { %450 = vperm.xlu1 %1534, %v348_v35   ;;  %455 = vperm.xlu0 %1533, %v349_v38  }
  0x36   : > { %1450 = vmatmul.mubr.msk.bf16.gmra.mrb[8].mxu0 %vm603_vm1, %v1539_v30  ;;  %1458 = vmatmul.mubr.msk.bf16.gmra.mrb[8].mxu1 %vm603_vm1, %v1540_v31 }
  0x37   : > { %721 = vmatprep.mubr.bf16.mxu0 %v1631_v1  ;;  %801 = vmatprep.mubr.bf16.mxu1 %v1631_v1 }
  0x39   : > { %460 = vperm.xlu1 %1534, %v350_v39   ;;  %465 = vperm.xlu0 %1533, %v351_v40  }
  0x3d   : > { %470 = vperm.xlu1 %1534, %v352_v41   ;;  %475 = vperm.xlu0 %1533, %v353_v44  }
  0x3e   : > { %1451 = vmatmul.mubr.msk.bf16.gmra.mrb[12].mxu0 %vm603_vm1, %v1541_v36  ;;  %1459 = vmatmul.mubr.msk.bf16.gmra.mrb[12].mxu1 %vm603_vm1, %v1542_v37 }
  0x3f   : > { %731 = vmatprep.mubr.bf16.mxu0 %v1631_v1  ;;  %811 = vmatprep.mubr.bf16.mxu1 %v1631_v1 }
  0x41   : > { %480 = vperm.xlu1 %1534, %v354_v45   ;;  %485 = vperm.xlu0 %1533, %v355_v46  }
  0x45   : > { %490 = vperm.xlu1 %1534, %v356_v47   ;;  %495 = vperm.xlu0 %1533, %v357_v50  }
  0x46   : > { %1452 = vmatmul.mubr.msk.bf16.gmra.mrb[16].mxu0 %vm603_vm1, %v1543_v42  ;;  %1460 = vmatmul.mubr.msk.bf16.gmra.mrb[16].mxu1 %vm603_vm1, %v1544_v43 }
  0x47   : > { %741 = vmatprep.mubr.bf16.mxu0 %v1631_v1  ;;  %821 = vmatprep.mubr.bf16.mxu1 %v1631_v1 }
  0x49   : > { %500 = vperm.xlu1 %1534, %v358_v51   ;;  %505 = vperm.xlu0 %1533, %v359_v52  }
  0x4d   : > { %510 = vperm.xlu1 %1534, %v360_v53   ;;  %515 = vperm.xlu0 %1533, %v361_v56  }
  0x4e   : > { %1453 = vmatmul.mubr.msk.bf16.gmra.mrb[20].mxu0 %vm603_vm1, %v1545_v48  ;;  %1461 = vmatmul.mubr.msk.bf16.gmra.mrb[20].mxu1 %vm603_vm1, %v1546_v49 }
  0x4f   : > { %751 = vmatprep.mubr.bf16.mxu0 %v1631_v1  ;;  %831 = vmatprep.mubr.bf16.mxu1 %v1631_v1 }
  0x51   : > { %520 = vperm.xlu1 %1534, %v362_v57  }
  0x56   : > { %1454 = vmatmul.mubr.msk.bf16.gmra.mrb[24].mxu0 %vm603_vm1, %v1547_v54  ;;  %1462 = vmatmul.mubr.msk.bf16.gmra.mrb[24].mxu1 %vm603_vm1, %v1548_v55 }
  0x57   : > { %761 = vmatprep.mubr.bf16.mxu0 %v1631_v1  ;;  %841 = vmatprep.mubr.bf16.mxu1 %v1631_v1 }
  0x5e   : > { %1455 = vmatmul.mubr.msk.bf16.gmra.mrb[28].mxu0 %vm603_vm1, %v1549_v58  ;;  %1463 = vmatmul.mubr.msk.bf16.gmra.mrb[28].mxu1 %vm603_vm1, %v1550_v59 }
  0x8f   : > { %v366_v61 = vpop.permute.xlu0 %365 }
  0x91   : > { %v376_v62 = vpop.permute.xlu1 %375 }
  0x93   : > { %v371_v63 = vpop.permute.xlu0 %370 }
  0x95   : > { %v1925_v0 = vpop.permute.xlu1 %380 }
  0x97   : > { %v1927_v1 = vpop.permute.xlu0 %385 }
  0x99   : > { %v1929_v2 = vpop.permute.xlu1 %390 }
  0x9b   : > { %v1931_v3 = vpop.permute.xlu0 %395 }
  0xa0   : > { %v1933_v4 = vpop.permute.xlu1 %400  ;;  %v1935_v5 = vpop.permute.xlu0 %405 }
  0xa4   : > { %v1937_v6 = vpop.permute.xlu1 %410  ;;  %v1939_v7 = vpop.permute.xlu0 %415 }
  0xa8   : > { %v1941_v8 = vpop.permute.xlu1 %420  ;;  %v1943_v9 = vpop.permute.xlu0 %425 }
  0xac   : > { %v1945_v10 = vpop.permute.xlu1 %430  ;;  %v1947_v11 = vpop.permute.xlu0 %435 }
  0xb0   : > { %v1949_v12 = vpop.permute.xlu1 %440  ;;  %v446_v13 = vpop.permute.xlu0 %445 }
  0xb4   : > { %v451_v14 = vpop.permute.xlu1 %450  ;;  %v456_v39 = vpop.permute.xlu0 %455 }
  0xb8   : > { %v461_v40 = vpop.permute.xlu1 %460 }
  0xf9   : > { %v693_v15 = vpop.f32.mrb[0].mxu0  ;;  %v773_v16 = vpop.f32.mrb[0].mxu1 }
  0xfa   : > { %v694_v17 = vadd.f32 %v693_v15, %v366_v61  ;;  %v774_v18 = vadd.f32 %v773_v16, %v446_v13  ;;  %v695_v19 = vpop.f32.mrb[1].mxu0  ;;  %v775_v20 = vpop.f32.mrb[1].mxu1 }
  0xfb   : > { %v696_v21 = vadd.f32 %v695_v19, %v366_v61  ;;  %v776_v22 = vadd.f32 %v775_v20, %v446_v13  ;;  %v697_v23 = vpop.f32.mrb[2].mxu0  ;;  %v777_v24 = vpop.f32.mrb[2].mxu1 }
  0xfc   : > { %v698_v25 = vadd.f32 %v697_v23, %v371_v63  ;;  %v778_v26 = vadd.f32 %v777_v24, %v451_v14  ;;  %v699_v27 = vpop.f32.mrb[3].mxu0  ;;  %v779_v28 = vpop.f32.mrb[3].mxu1  ;;  %v852_v33 = vmax.f32 %v694_v17, 0.0  ;;  %v884_v34 = vmax.f32 %v774_v18, 0.0 }
  0xfd   : > { %v853_v29 = vmax.f32 %v696_v21, 0.0  ;;  %v885_v30 = vmax.f32 %v776_v22, 0.0  ;;  %v700_v31 = vadd.f32 %v699_v27, %v371_v63  ;;  %v780_v32 = vadd.f32 %v779_v28, %v451_v14  ;;  %v466_v22 = vpop.permute.xlu0 %465  ;;  %v471_v23 = vpop.permute.xlu1 %470 }
  0xfe   : > { %v854_v41 = vmax.f32 %v698_v25, 0.0  ;;  %v886_v44 = vmax.f32 %v778_v26, 0.0 }
  0xff   : > { %v855_v35 = vmax.f32 %v700_v31, 0.0  ;;  %v887_v36 = vmax.f32 %v780_v32, 0.0  ;;  %v1013_v37 = vsel %vm948_vm3, %v885_v30, 0.0  ;;  %v949_v38 = vsel %vm948_vm3, %v853_v29, 0.0 }
 0x100   : > { %v1014_v42 = vadd.f32 %v1013_v37, %v884_v34  ;;  %v950_v43 = vadd.f32 %v949_v38, %v852_v33 }
 0x101   : > { %v703_v45 = vpop.f32.mrb[4].mxu0  ;;  %v783_v46 = vpop.f32.mrb[4].mxu1  ;;  %v953_v47 = vsel %vm948_vm3, %v855_v35, 0.0  ;;  %v1017_v48 = vsel %vm948_vm3, %v887_v36, 0.0 }
 0x102   : > { %v704_v49 = vadd.f32 %v703_v45, %v376_v62  ;;  %v784_v50 = vadd.f32 %v783_v46, %v456_v39  ;;  %v785_v51 = vpop.f32.mrb[5].mxu1  ;;  %1015 = vadd.xlane.f32.xlu1 %v1014_v42  ;;  %v705_v52 = vpop.f32.mrb[5].mxu0  ;;  %951 = vadd.xlane.f32.xlu0 %v950_v43  ;;  %v954_v53 = vadd.f32 %v953_v47, %v854_v41 }
 0x103   : > { %v786_v54 = vadd.f32 %v785_v51, %v456_v39  ;;  %v706_v55 = vadd.f32 %v705_v52, %v376_v62  ;;  %v707_v56 = vpop.f32.mrb[6].mxu0  ;;  %v787_v57 = vpop.f32.mrb[6].mxu1  ;;  %v1018_v58 = vadd.f32 %v1017_v48, %v886_v44 }
 0x104   : > { %v708_v59 = vadd.f32 %v707_v56, %v1925_v0  ;;  %v788_v60 = vadd.f32 %v787_v57, %v461_v40  ;;  %v709_v61 = vpop.f32.mrb[7].mxu0  ;;  %v789_v63 = vpop.f32.mrb[7].mxu1  ;;  %v856_v17 = vmax.f32 %v704_v49, 0.0  ;;  %v888_v18 = vmax.f32 %v784_v50, 0.0 }
 0x105   : > { %v889_v13 = vmax.f32 %v786_v54, 0.0  ;;  %v857_v14 = vmax.f32 %v706_v55, 0.0  ;;  %v710_v15 = vadd.f32 %v709_v61, %v1925_v0  ;;  %v790_v16 = vadd.f32 %v789_v63, %v461_v40  ;;  %v476_v54 = vpop.permute.xlu0 %475  ;;  %v481_v55 = vpop.permute.xlu1 %480 }
 0x106   : > { %955 = vadd.xlane.f32.xlu0 %v954_v53  ;;  %v858_v24 = vmax.f32 %v708_v59, 0.0  ;;  %v890_v27 = vmax.f32 %v788_v60, 0.0 }
 0x107   : > { %v859_v19 = vmax.f32 %v710_v15, 0.0  ;;  %v891_v20 = vmax.f32 %v790_v16, 0.0  ;;  %v957_v62 = vsel %vm948_vm3, %v857_v14, 0.0  ;;  %v1021_v21 = vsel %vm948_vm3, %v889_v13, 0.0 }
 0x108   : > { %v958_v25 = vadd.f32 %v957_v62, %v856_v17  ;;  %v1022_v26 = vadd.f32 %v1021_v21, %v888_v18 }
 0x109   : > { %v713_v28 = vpop.f32.mrb[8].mxu0  ;;  %v793_v29 = vpop.f32.mrb[8].mxu1  ;;  %v961_v0 = vsel %vm948_vm3, %v859_v19, 0.0  ;;  %v1025_v30 = vsel %vm948_vm3, %v891_v20, 0.0 }
 0x10a   : > { %v714_v31 = vadd.f32 %v713_v28, %v1927_v1  ;;  %v794_v32 = vadd.f32 %v793_v29, %v466_v22  ;;  %v715_v33 = vpop.f32.mrb[9].mxu0  ;;  %v795_v34 = vpop.f32.mrb[9].mxu1  ;;  %959 = vadd.xlane.f32.xlu1 %v958_v25  ;;  %1019 = vadd.xlane.f32.xlu0 %v1018_v58  ;;  %v962_v35 = vadd.f32 %v961_v0, %v858_v24 }
 0x10b   : > { %v716_v36 = vadd.f32 %v715_v33, %v1927_v1  ;;  %v796_v37 = vadd.f32 %v795_v34, %v466_v22  ;;  %v717_v38 = vpop.f32.mrb[10].mxu0  ;;  %v797_v39 = vpop.f32.mrb[10].mxu1  ;;  %v1026_v40 = vadd.f32 %v1025_v30, %v890_v27 }
 0x10c   : > { %v718_v41 = vadd.f32 %v717_v38, %v1929_v2  ;;  %v798_v42 = vadd.f32 %v797_v39, %v471_v23  ;;  %v719_v43 = vpop.f32.mrb[11].mxu0  ;;  %v799_v44 = vpop.f32.mrb[11].mxu1  ;;  %v860_v49 = vmax.f32 %v714_v31, 0.0  ;;  %v892_v50 = vmax.f32 %v794_v32, 0.0 }
 0x10d   : > { %v861_v45 = vmax.f32 %v716_v36, 0.0  ;;  %v893_v46 = vmax.f32 %v796_v37, 0.0  ;;  %v720_v47 = vadd.f32 %v719_v43, %v1929_v2  ;;  %v800_v48 = vadd.f32 %v799_v44, %v471_v23  ;;  %v486_v34 = vpop.permute.xlu0 %485 }
 0x10e   : > { %963 = vadd.xlane.f32.xlu1 %v962_v35  ;;  %1023 = vadd.xlane.f32.xlu0 %v1022_v26  ;;  %v862_v56 = vmax.f32 %v718_v41, 0.0  ;;  %v894_v59 = vmax.f32 %v798_v42, 0.0  ;;  %v491_v35 = vpop.permute.xlu1 %490 }
 0x10f   : > { %v863_v51 = vmax.f32 %v720_v47, 0.0  ;;  %v895_v1 = vmax.f32 %v800_v48, 0.0  ;;  %v965_v52 = vsel %vm948_vm3, %v861_v45, 0.0  ;;  %v1029_v53 = vsel %vm948_vm3, %v893_v46, 0.0 }
 0x110   : > { %v966_v57 = vadd.f32 %v965_v52, %v860_v49  ;;  %v1030_v58 = vadd.f32 %v1029_v53, %v892_v50 }
 0x111   : > { %v723_v60 = vpop.f32.mrb[12].mxu0  ;;  %v803_v61 = vpop.f32.mrb[12].mxu1  ;;  %v969_v2 = vsel %vm948_vm3, %v863_v51, 0.0  ;;  %v1033_v63 = vsel %vm948_vm3, %v895_v1, 0.0 }
 0x112   : > { %v724_v13 = vadd.f32 %v723_v60, %v1931_v3  ;;  %v804_v14 = vadd.f32 %v803_v61, %v476_v54  ;;  %v725_v15 = vpop.f32.mrb[13].mxu0  ;;  %v805_v16 = vpop.f32.mrb[13].mxu1  ;;  %967 = vadd.xlane.f32.xlu1 %v966_v57  ;;  %1027 = vadd.xlane.f32.xlu0 %v1026_v40  ;;  %v970_v17 = vadd.f32 %v969_v2, %v862_v56 }
 0x113   : > { %v726_v18 = vadd.f32 %v725_v15, %v1931_v3  ;;  %v806_v19 = vadd.f32 %v805_v16, %v476_v54  ;;  %v727_v20 = vpop.f32.mrb[14].mxu0  ;;  %v807_v62 = vpop.f32.mrb[14].mxu1  ;;  %v1034_v21 = vadd.f32 %v1033_v63, %v894_v59 }
 0x114   : > { %v728_v22 = vadd.f32 %v727_v20, %v1933_v4  ;;  %v808_v23 = vadd.f32 %v807_v62, %v481_v55  ;;  %v729_v24 = vpop.f32.mrb[15].mxu0  ;;  %v809_v25 = vpop.f32.mrb[15].mxu1  ;;  %v864_v0 = vmax.f32 %v724_v13, 0.0  ;;  %v896_v30 = vmax.f32 %v804_v14, 0.0 }
 0x115   : > { %v865_v26 = vmax.f32 %v726_v18, 0.0  ;;  %v897_v27 = vmax.f32 %v806_v19, 0.0  ;;  %v730_v28 = vadd.f32 %v729_v24, %v1933_v4  ;;  %v810_v29 = vadd.f32 %v809_v25, %v481_v55  ;;  %v496_v14 = vpop.permute.xlu0 %495  ;;  %v501_v15 = vpop.permute.xlu1 %500 }
 0x116   : > { %971 = vadd.xlane.f32.xlu1 %v970_v17  ;;  %1031 = vadd.xlane.f32.xlu0 %v1030_v58  ;;  %v866_v36 = vmax.f32 %v728_v22, 0.0  ;;  %v898_v39 = vmax.f32 %v808_v23, 0.0 }
 0x117   : > { %v867_v31 = vmax.f32 %v730_v28, 0.0  ;;  %v899_v3 = vmax.f32 %v810_v29, 0.0  ;;  %v973_v32 = vsel %vm948_vm3, %v865_v26, 0.0  ;;  %v1037_v33 = vsel %vm948_vm3, %v897_v27, 0.0 }
 0x118   : > { %v974_v37 = vadd.f32 %v973_v32, %v864_v0  ;;  %v1038_v38 = vadd.f32 %v1037_v33, %v896_v30 }
 0x119   : > { %v733_v40 = vpop.f32.mrb[16].mxu0  ;;  %v813_v41 = vpop.f32.mrb[16].mxu1  ;;  %v977_v4 = vsel %vm948_vm3, %v867_v31, 0.0  ;;  %v1041_v42 = vsel %vm948_vm3, %v899_v3, 0.0 }
 0x11a   : > { %v734_v43 = vadd.f32 %v733_v40, %v1935_v5  ;;  %v814_v44 = vadd.f32 %v813_v41, %v486_v34  ;;  %v735_v45 = vpop.f32.mrb[17].mxu0  ;;  %v815_v46 = vpop.f32.mrb[17].mxu1  ;;  %975 = vadd.xlane.f32.xlu1 %v974_v37  ;;  %1035 = vadd.xlane.f32.xlu0 %v1034_v21  ;;  %v978_v47 = vadd.f32 %v977_v4, %v866_v36 }
 0x11b   : > { %v736_v48 = vadd.f32 %v735_v45, %v1935_v5  ;;  %v816_v49 = vadd.f32 %v815_v46, %v486_v34  ;;  %v737_v50 = vpop.f32.mrb[18].mxu0  ;;  %v817_v51 = vpop.f32.mrb[18].mxu1  ;;  %v1042_v1 = vadd.f32 %v1041_v42, %v898_v39 }
 0x11c   : > { %v738_v52 = vadd.f32 %v737_v50, %v1937_v6  ;;  %v818_v53 = vadd.f32 %v817_v51, %v491_v35  ;;  %v739_v54 = vpop.f32.mrb[19].mxu0  ;;  %v819_v55 = vpop.f32.mrb[19].mxu1  ;;  %v868_v60 = vmax.f32 %v734_v43, 0.0  ;;  %v900_v61 = vmax.f32 %v814_v44, 0.0 }
 0x11d   : > { %v869_v56 = vmax.f32 %v736_v48, 0.0  ;;  %v901_v57 = vmax.f32 %v816_v49, 0.0  ;;  %v740_v58 = vadd.f32 %v739_v54, %v1937_v6  ;;  %v820_v59 = vadd.f32 %v819_v55, %v491_v35  ;;  %v506_v42 = vpop.permute.xlu0 %505  ;;  %v511_v43 = vpop.permute.xlu1 %510 }
 0x11e   : > { %979 = vadd.xlane.f32.xlu1 %v978_v47  ;;  %1039 = vadd.xlane.f32.xlu0 %v1038_v38  ;;  %v870_v16 = vmax.f32 %v738_v52, 0.0  ;;  %v902_v19 = vmax.f32 %v818_v53, 0.0 }
 0x11f   : > { %v871_v2 = vmax.f32 %v740_v58, 0.0  ;;  %v903_v5 = vmax.f32 %v820_v59, 0.0  ;;  %v981_v63 = vsel %vm948_vm3, %v869_v56, 0.0  ;;  %v1045_v13 = vsel %vm948_vm3, %v901_v57, 0.0 }
 0x120   : > { %v982_v17 = vadd.f32 %v981_v63, %v868_v60  ;;  %v1046_v18 = vadd.f32 %v1045_v13, %v900_v61 }
 0x121   : > { %v743_v20 = vpop.f32.mrb[20].mxu0  ;;  %v823_v62 = vpop.f32.mrb[20].mxu1  ;;  %v985_v6 = vsel %vm948_vm3, %v871_v2, 0.0  ;;  %v1049_v21 = vsel %vm948_vm3, %v903_v5, 0.0 }
 0x122   : > { %v744_v22 = vadd.f32 %v743_v20, %v1939_v7  ;;  %v824_v23 = vadd.f32 %v823_v62, %v496_v14  ;;  %v745_v24 = vpop.f32.mrb[21].mxu0  ;;  %v825_v25 = vpop.f32.mrb[21].mxu1  ;;  %983 = vadd.xlane.f32.xlu1 %v982_v17  ;;  %1043 = vadd.xlane.f32.xlu0 %v1042_v1  ;;  %v986_v26 = vadd.f32 %v985_v6, %v870_v16 }
 0x123   : > { %v746_v27 = vadd.f32 %v745_v24, %v1939_v7  ;;  %v826_v28 = vadd.f32 %v825_v25, %v496_v14  ;;  %v747_v29 = vpop.f32.mrb[22].mxu0  ;;  %v827_v0 = vpop.f32.mrb[22].mxu1  ;;  %v1050_v30 = vadd.f32 %v1049_v21, %v902_v19 }
 0x124   : > { %v748_v31 = vadd.f32 %v747_v29, %v1941_v8  ;;  %v828_v3 = vadd.f32 %v827_v0, %v501_v15  ;;  %v749_v32 = vpop.f32.mrb[23].mxu0  ;;  %v829_v33 = vpop.f32.mrb[23].mxu1  ;;  %v872_v38 = vmax.f32 %v744_v22, 0.0  ;;  %v904_v39 = vmax.f32 %v824_v23, 0.0 }
 0x125   : > { %v873_v34 = vmax.f32 %v746_v27, 0.0  ;;  %v905_v35 = vmax.f32 %v826_v28, 0.0  ;;  %v750_v36 = vadd.f32 %v749_v32, %v1941_v8  ;;  %v830_v37 = vadd.f32 %v829_v33, %v501_v15  ;;  %v516_v62 = vpop.permute.xlu0 %515  ;;  %v521_v6 = vpop.permute.xlu1 %520 }
 0x126   : > { %987 = vadd.xlane.f32.xlu1 %v986_v26  ;;  %1047 = vadd.xlane.f32.xlu0 %v1046_v18  ;;  %v874_v44 = vmax.f32 %v748_v31, 0.0  ;;  %v906_v47 = vmax.f32 %v828_v3, 0.0 }
 0x127   : > { %v875_v40 = vmax.f32 %v750_v36, 0.0  ;;  %v907_v7 = vmax.f32 %v830_v37, 0.0  ;;  %v989_v41 = vsel %vm948_vm3, %v873_v34, 0.0  ;;  %v1053_v4 = vsel %vm948_vm3, %v905_v35, 0.0 }
 0x128   : > { %v990_v45 = vadd.f32 %v989_v41, %v872_v38  ;;  %v1054_v46 = vadd.f32 %v1053_v4, %v904_v39 }
 0x129   : > { %v753_v48 = vpop.f32.mrb[24].mxu0  ;;  %v833_v49 = vpop.f32.mrb[24].mxu1  ;;  %v993_v8 = vsel %vm948_vm3, %v875_v40, 0.0  ;;  %v1057_v50 = vsel %vm948_vm3, %v907_v7, 0.0 }
 0x12a   : > { %v754_v51 = vadd.f32 %v753_v48, %v1943_v9  ;;  %v834_v1 = vadd.f32 %v833_v49, %v506_v42  ;;  %v755_v52 = vpop.f32.mrb[25].mxu0  ;;  %v835_v53 = vpop.f32.mrb[25].mxu1  ;;  %991 = vadd.xlane.f32.xlu1 %v990_v45  ;;  %1051 = vadd.xlane.f32.xlu0 %v1050_v30  ;;  %v994_v54 = vadd.f32 %v993_v8, %v874_v44 }
 0x12b   : > { %v756_v55 = vadd.f32 %v755_v52, %v1943_v9  ;;  %v836_v56 = vadd.f32 %v835_v53, %v506_v42  ;;  %v757_v57 = vpop.f32.mrb[26].mxu0  ;;  %v837_v58 = vpop.f32.mrb[26].mxu1  ;;  %v1058_v59 = vadd.f32 %v1057_v50, %v906_v47  ;;  %v932_v52 = vld [vmem:[#allocation2 + $0x80] sm:$0xff] }
 0x12c   : > { %v758_v60 = vadd.f32 %v757_v57, %v1945_v10  ;;  %v838_v61 = vadd.f32 %v837_v58, %v511_v43  ;;  %v759_v2 = vpop.f32.mrb[27].mxu0  ;;  %v839_v5 = vpop.f32.mrb[27].mxu1  ;;  %v876_v16 = vmax.f32 %v754_v51, 0.0  ;;  %v908_v17 = vmax.f32 %v834_v1, 0.0  ;;  %v916_v53 = vld [vmem:[#allocation2] sm:$0xff]  ;;  %v917_v58 = vld [vmem:[#allocation2 + $0x8] sm:$0xff] }
 0x12d   : > { %v877_v63 = vmax.f32 %v756_v55, 0.0  ;;  %v909_v13 = vmax.f32 %v836_v56, 0.0  ;;  %v760_v14 = vadd.f32 %v759_v2, %v1945_v10  ;;  %v840_v15 = vadd.f32 %v839_v5, %v511_v43  ;;  %v933_v2 = vld [vmem:[#allocation2 + $0x88] sm:$0xff] }
 0x12e   : > { %995 = vadd.xlane.f32.xlu1 %v994_v54  ;;  %1055 = vadd.xlane.f32.xlu0 %v1054_v46  ;;  %v878_v21 = vmax.f32 %v758_v60, 0.0  ;;  %v910_v24 = vmax.f32 %v838_v61, 0.0  ;;  %v918_v61 = vld [vmem:[#allocation2 + $0x10] sm:$0xff] }
 0x12f   : > { %v879_v18 = vmax.f32 %v760_v14, 0.0  ;;  %v911_v9 = vmax.f32 %v840_v15, 0.0  ;;  %v997_v19 = vsel %vm948_vm3, %v877_v63, 0.0  ;;  %v1061_v20 = vsel %vm948_vm3, %v909_v13, 0.0  ;;  %v919_v15 = vld [vmem:[#allocation2 + $0x18] sm:$0xff] }
 0x130   : > { %v998_v22 = vadd.f32 %v997_v19, %v876_v16  ;;  %v1062_v23 = vadd.f32 %v1061_v20, %v908_v17  ;;  %v934_v16 = vld [vmem:[#allocation2 + $0x90] sm:$0xff] }
 0x131   : > { %v763_v25 = vpop.f32.mrb[28].mxu0  ;;  %v843_v26 = vpop.f32.mrb[28].mxu1  ;;  %v1001_v10 = vsel %vm948_vm3, %v879_v18, 0.0  ;;  %v1065_v27 = vsel %vm948_vm3, %v911_v9, 0.0 }
 0x132   : > { %v764_v28 = vadd.f32 %v763_v25, %v1947_v11  ;;  %v844_v29 = vadd.f32 %v843_v26, %v516_v62  ;;  %v765_v0 = vpop.f32.mrb[29].mxu0  ;;  %v845_v30 = vpop.f32.mrb[29].mxu1  ;;  %999 = vadd.xlane.f32.xlu1 %v998_v22  ;;  %1059 = vadd.xlane.f32.xlu0 %v1058_v59  ;;  %v1002_v31 = vadd.f32 %v1001_v10, %v878_v21  ;;  %v920_v22 = vld [vmem:[#allocation2 + $0x20] sm:$0xff] }
 0x133   : > { %v766_v3 = vadd.f32 %v765_v0, %v1947_v11  ;;  %v846_v32 = vadd.f32 %v845_v30, %v516_v62  ;;  %v767_v33 = vpop.f32.mrb[30].mxu0  ;;  %v847_v34 = vpop.f32.mrb[30].mxu1  ;;  %v1066_v35 = vadd.f32 %v1065_v27, %v910_v24  ;;  %v936_v0 = vld [vmem:[#allocation2 + $0xa0] sm:$0xff] }
 0x134   : > { %v768_v36 = vadd.f32 %v767_v33, %v1949_v12  ;;  %v848_v37 = vadd.f32 %v847_v34, %v521_v6  ;;  %v769_v38 = vpop.f32.mrb[31].mxu0  ;;  %v849_v39 = vpop.f32.mrb[31].mxu1  ;;  %v880_v42 = vmax.f32 %v764_v28, 0.0  ;;  %v912_v43 = vmax.f32 %v844_v29, 0.0  ;;  %v921_v29 = vld [vmem:[#allocation2 + $0x28] sm:$0xff] }
 0x135   : > { %v881_v40 = vmax.f32 %v766_v3, 0.0  ;;  %v913_v7 = vmax.f32 %v846_v32, 0.0  ;;  %v770_v41 = vadd.f32 %v769_v38, %v1949_v12  ;;  %v850_v4 = vadd.f32 %v849_v39, %v521_v6  ;;  %v937_v38 = vld [vmem:[#allocation2 + $0xa8] sm:$0xff] }
 0x136   : > { %1003 = vadd.xlane.f32.xlu1 %v1002_v31  ;;  %1063 = vadd.xlane.f32.xlu0 %v1062_v23  ;;  %v882_v47 = vmax.f32 %v768_v36, 0.0  ;;  %v914_v48 = vmax.f32 %v848_v37, 0.0  ;;  %v935_v23 = vld [vmem:[#allocation2 + $0x98] sm:$0xff]  ;;  %v922_v37 = vld [vmem:[#allocation2 + $0x30] sm:$0xff] }
 0x137   : > { %v883_v44 = vmax.f32 %v770_v41, 0.0  ;;  %v915_v11 = vmax.f32 %v850_v4, 0.0  ;;  %v1005_v45 = vsel %vm948_vm3, %v881_v40, 0.0  ;;  %v1069_v46 = vsel %vm948_vm3, %v913_v7, 0.0 }
 0x138   : > { %v1006_v49 = vadd.f32 %v1005_v45, %v880_v42  ;;  %v1070_v8 = vadd.f32 %v1069_v46, %v912_v43  ;;  %v938_v45 = vld [vmem:[#allocation2 + $0xb0] sm:$0xff] }
 0x139   : > { %v1009_v50 = vsel %vm948_vm3, %v883_v44, 0.0  ;;  %v1073_v51 = vsel %vm948_vm3, %v915_v11, 0.0  ;;  %v923_v11 = vld [vmem:[#allocation2 + $0x38] sm:$0xff] }
 0x13a   : > { %1007 = vadd.xlane.f32.xlu1 %v1006_v49  ;;  %1067 = vadd.xlane.f32.xlu0 %v1066_v35  ;;  %v1010_v12 = vadd.f32 %v1009_v50, %v882_v47  ;;  %v1074_v1 = vadd.f32 %v1073_v51, %v914_v48 }
 0x13e   : > { %1011 = vadd.xlane.f32.xlu1 %v1010_v12  ;;  %1071 = vadd.xlane.f32.xlu0 %v1070_v8 }
 0x142   : > { %1075 = vadd.xlane.f32.xlu0 %v1074_v1  ;;  %v924_v1 = vld [vmem:[#allocation2 + $0x40] sm:$0xff] }
 0x18f   : > { %v1016_v54 = vpop.xlane.xlu1 %1015  ;;  %v952_v55 = vpop.xlane.xlu0 %951 }
 0x190   : > { %v1093_v56 = vadd.f32 %v1016_v54, %v932_v52  ;;  %v1077_v57 = vadd.f32 %v952_v55, %v916_v53  ;;  %v939_v52 = vld [vmem:[#allocation2 + $0xb8] sm:$0xff] }
 0x192   : > { %1126 = vst.msk [vmem:[#allocation2 + $0x80] sm:$0xff] %vm256_vm2, %v1093_v56  ;;  %1110 = vst.msk [vmem:[#allocation2] sm:$0xff] %vm256_vm2, %v1077_v57 }
 0x193   : > { %v956_v59 = vpop.xlane.xlu0 %955 }
 0x194   : > { %v1078_v60 = vadd.f32 %v956_v59, %v917_v58 }
 0x196   : > { %1111 = vst.msk [vmem:[#allocation2 + $0x8] sm:$0xff] %vm256_vm2, %v1078_v60 }
 0x197   : > { %v960_v5 = vpop.xlane.xlu1 %959  ;;  %v1020_v63 = vpop.xlane.xlu0 %1019 }
 0x198   : > { %v1079_v13 = vadd.f32 %v960_v5, %v918_v61  ;;  %v1094_v14 = vadd.f32 %v1020_v63, %v933_v2  ;;  %v925_v61 = vld [vmem:[#allocation2 + $0x48] sm:$0xff]  ;;  %v940_v2 = vld [vmem:[#allocation2 + $0xc0] sm:$0xff] }
 0x199   : > { %v1161_v17 = vld [vmem:[#allocation2 + $0x80] sm:$0xff] }
 0x19a   : > { %v1145_v18 = vld [vmem:[#allocation2] sm:$0xff]  ;;  %1112 = vst.msk [vmem:[#allocation2 + $0x10] sm:$0xff] %vm256_vm2, %v1079_v13  ;;  %1127 = vst.msk [vmem:[#allocation2 + $0x88] sm:$0xff] %vm256_vm2, %v1094_v14  ;;  %v1193_v9 = vmul.f32 0.0052083335, %v1161_v17 }
 0x19b   : > { %v1177_v19 = vmul.f32 0.0052083335, %v1145_v18  ;;  %v964_v20 = vpop.xlane.xlu1 %963  ;;  %v1024_v62 = vpop.xlane.xlu0 %1023 }
 0x19c   : > { %v1080_v6 = vadd.f32 %v964_v20, %v919_v15  ;;  %v1095_v21 = vadd.f32 %v1024_v62, %v934_v16  ;;  %1241 = vxpose.xlu0.b32.start [1/16] (narrow) %v1193_v9, 8  ;;  %v926_v9 = vld [vmem:[#allocation2 + $0x50] sm:$0xff] }
 0x19d   : > { %1209 = vxpose.xlu1.b32.start [1/16] (narrow) %v1177_v19, 8  ;;  %v1146_v24 = vld [vmem:[#allocation2 + $0x8] sm:$0xff] }
 0x19e   : > { %1113 = vst.msk [vmem:[#allocation2 + $0x18] sm:$0xff] %vm256_vm2, %v1080_v6  ;;  %1128 = vst.msk [vmem:[#allocation2 + $0x90] sm:$0xff] %vm256_vm2, %v1095_v21  ;;  %v1178_v25 = vmul.f32 0.0052083335, %v1146_v24  ;;  %v941_v19 = vld [vmem:[#allocation2 + $0xc8] sm:$0xff] }
 0x19f   : > { %v968_v26 = vpop.xlane.xlu1 %967  ;;  %v1028_v10 = vpop.xlane.xlu0 %1027 }
 0x1a0   : > { %v1081_v27 = vadd.f32 %v968_v26, %v920_v22  ;;  %v1096_v28 = vadd.f32 %v1028_v10, %v935_v23  ;;  %v927_v26 = vld [vmem:[#allocation2 + $0x58] sm:$0xff]  ;;  %v942_v10 = vld [vmem:[#allocation2 + $0xd0] sm:$0xff] }
 0x1a1   : > { %1210 = vxpose.xlu1.b32.cont [2/16] (narrow) %v1178_v25, 8  ;;  %v1147_v30 = vld [vmem:[#allocation2 + $0x10] sm:$0xff]  ;;  %v1162_v31 = vld [vmem:[#allocation2 + $0x88] sm:$0xff] }
 0x1a2   : > { %1114 = vst.msk [vmem:[#allocation2 + $0x20] sm:$0xff] %vm256_vm2, %v1081_v27  ;;  %1129 = vst.msk [vmem:[#allocation2 + $0x98] sm:$0xff] %vm256_vm2, %v1096_v28  ;;  %v1179_v3 = vmul.f32 0.0052083335, %v1147_v30  ;;  %v1194_v32 = vmul.f32 0.0052083335, %v1162_v31 }
 0x1a3   : > { %v972_v33 = vpop.xlane.xlu1 %971  ;;  %v1032_v34 = vpop.xlane.xlu0 %1031 }
 0x1a4   : > { %v1082_v35 = vadd.f32 %v972_v33, %v921_v29  ;;  %v1097_v36 = vadd.f32 %v1032_v34, %v936_v0  ;;  %1242 = vxpose.xlu0.b32.cont [2/16] (narrow) %v1194_v32, 8  ;;  %v928_v33 = vld [vmem:[#allocation2 + $0x60] sm:$0xff]  ;;  %v943_v34 = vld [vmem:[#allocation2 + $0xd8] sm:$0xff] }
 0x1a5   : > { %1211 = vxpose.xlu1.b32.cont [3/16] (narrow) %v1179_v3, 8  ;;  %v1148_v39 = vld [vmem:[#allocation2 + $0x18] sm:$0xff]  ;;  %v1163_v40 = vld [vmem:[#allocation2 + $0x90] sm:$0xff] }
 0x1a6   : > { %1115 = vst.msk [vmem:[#allocation2 + $0x28] sm:$0xff] %vm256_vm2, %v1082_v35  ;;  %1130 = vst.msk [vmem:[#allocation2 + $0xa0] sm:$0xff] %vm256_vm2, %v1097_v36  ;;  %v1180_v7 = vmul.f32 0.0052083335, %v1148_v39  ;;  %v1195_v41 = vmul.f32 0.0052083335, %v1163_v40 }
 0x1a7   : > { %v976_v4 = vpop.xlane.xlu1 %975  ;;  %v1036_v42 = vpop.xlane.xlu0 %1035 }
 0x1a8   : > { %v1083_v43 = vadd.f32 %v976_v4, %v922_v37  ;;  %v1098_v44 = vadd.f32 %v1036_v42, %v937_v38  ;;  %1243 = vxpose.xlu0.b32.cont [3/16] (narrow) %v1195_v41, 8  ;;  %v929_v4 = vld [vmem:[#allocation2 + $0x68] sm:$0xff]  ;;  %v944_v42 = vld [vmem:[#allocation2 + $0xe0] sm:$0xff] }
 0x1a9   : > { %1212 = vxpose.xlu1.b32.cont [4/16] (narrow) %v1180_v7, 8  ;;  %v1149_v46 = vld [vmem:[#allocation2 + $0x20] sm:$0xff]  ;;  %v1164_v47 = vld [vmem:[#allocation2 + $0x98] sm:$0xff] }
 0x1aa   : > { %1116 = vst.msk [vmem:[#allocation2 + $0x30] sm:$0xff] %vm256_vm2, %v1083_v43  ;;  %1131 = vst.msk [vmem:[#allocation2 + $0xa8] sm:$0xff] %vm256_vm2, %v1098_v44  ;;  %v1181_v48 = vmul.f32 0.0052083335, %v1149_v46  ;;  %v1196_v49 = vmul.f32 0.0052083335, %v1164_v47 }
 0x1ab   : > { %v980_v8 = vpop.xlane.xlu1 %979  ;;  %v1040_v50 = vpop.xlane.xlu0 %1039 }
 0x1ac   : > { %v1084_v51 = vadd.f32 %v980_v8, %v923_v11  ;;  %v1099_v12 = vadd.f32 %v1040_v50, %v938_v45  ;;  %1244 = vxpose.xlu0.b32.cont [4/16] (narrow) %v1196_v49, 8  ;;  %v930_v8 = vld [vmem:[#allocation2 + $0x70] sm:$0xff]  ;;  %v945_v50 = vld [vmem:[#allocation2 + $0xe8] sm:$0xff] }
 0x1ad   : > { %1213 = vxpose.xlu1.b32.cont [5/16] (narrow) %v1181_v48, 8  ;;  %v1150_v53 = vld [vmem:[#allocation2 + $0x28] sm:$0xff]  ;;  %v1165_v54 = vld [vmem:[#allocation2 + $0xa0] sm:$0xff] }
 0x1ae   : > { %1117 = vst.msk [vmem:[#allocation2 + $0x38] sm:$0xff] %vm256_vm2, %v1084_v51  ;;  %1132 = vst.msk [vmem:[#allocation2 + $0xb0] sm:$0xff] %vm256_vm2, %v1099_v12  ;;  %v1182_v55 = vmul.f32 0.0052083335, %v1150_v53  ;;  %v1197_v56 = vmul.f32 0.0052083335, %v1165_v54 }
 0x1af   : > { %v984_v57 = vpop.xlane.xlu1 %983  ;;  %v1044_v58 = vpop.xlane.xlu0 %1043 }
 0x1b0   : > { %v1085_v59 = vadd.f32 %v984_v57, %v924_v1  ;;  %v1100_v60 = vadd.f32 %v1044_v58, %v939_v52  ;;  %1245 = vxpose.xlu0.b32.cont [5/16] (narrow) %v1197_v56, 8  ;;  %v931_v57 = vld [vmem:[#allocation2 + $0x78] sm:$0xff]  ;;  %v946_v58 = vld [vmem:[#allocation2 + $0xf0] sm:$0xff] }
 0x1b1   : > { %1214 = vxpose.xlu1.b32.cont [6/16] (narrow) %v1182_v55, 8  ;;  %v1151_v5 = vld [vmem:[#allocation2 + $0x30] sm:$0xff]  ;;  %v1166_v63 = vld [vmem:[#allocation2 + $0xa8] sm:$0xff] }
 0x1b2   : > { %1118 = vst.msk [vmem:[#allocation2 + $0x40] sm:$0xff] %vm256_vm2, %v1085_v59  ;;  %1133 = vst.msk [vmem:[#allocation2 + $0xb8] sm:$0xff] %vm256_vm2, %v1100_v60  ;;  %v1183_v13 = vmul.f32 0.0052083335, %v1151_v5  ;;  %v1198_v14 = vmul.f32 0.0052083335, %v1166_v63 }
 0x1b3   : > { %v988_v15 = vpop.xlane.xlu1 %987  ;;  %v1048_v16 = vpop.xlane.xlu0 %1047 }
 0x1b4   : > { %v1086_v17 = vadd.f32 %v988_v15, %v925_v61  ;;  %v1101_v18 = vadd.f32 %v1048_v16, %v940_v2  ;;  %1246 = vxpose.xlu0.b32.cont [6/16] (narrow) %v1198_v14, 8  ;;  %v947_v15 = vld [vmem:[#allocation2 + $0xf8] sm:$0xff] }
 0x1b5   : > { %1215 = vxpose.xlu1.b32.cont [7/16] (narrow) %v1183_v13, 8  ;;  %v1152_v20 = vld [vmem:[#allocation2 + $0x38] sm:$0xff]  ;;  %v1167_v62 = vld [vmem:[#allocation2 + $0xb0] sm:$0xff] }
 0x1b6   : > { %1119 = vst.msk [vmem:[#allocation2 + $0x48] sm:$0xff] %vm256_vm2, %v1086_v17  ;;  %1134 = vst.msk [vmem:[#allocation2 + $0xc0] sm:$0xff] %vm256_vm2, %v1101_v18  ;;  %v1184_v6 = vmul.f32 0.0052083335, %v1152_v20  ;;  %v1199_v21 = vmul.f32 0.0052083335, %v1167_v62 }
 0x1b7   : > { %v992_v22 = vpop.xlane.xlu1 %991  ;;  %v1052_v23 = vpop.xlane.xlu0 %1051 }
 0x1b8   : > { %v1087_v24 = vadd.f32 %v992_v22, %v926_v9  ;;  %v1102_v25 = vadd.f32 %v1052_v23, %v941_v19  ;;  %1247 = vxpose.xlu0.b32.cont [7/16] (narrow) %v1199_v21, 8 }
 0x1b9   : > { %1216 = vxpose.xlu1.b32.cont [8/16] (narrow) %v1184_v6, 8  ;;  %v1153_v27 = vld [vmem:[#allocation2 + $0x40] sm:$0xff]  ;;  %v1168_v28 = vld [vmem:[#allocation2 + $0xb8] sm:$0xff] }
 0x1ba   : > { %1120 = vst.msk [vmem:[#allocation2 + $0x50] sm:$0xff] %vm256_vm2, %v1087_v24  ;;  %1135 = vst.msk [vmem:[#allocation2 + $0xc8] sm:$0xff] %vm256_vm2, %v1102_v25  ;;  %v1185_v29 = vmul.f32 0.0052083335, %v1153_v27  ;;  %v1200_v0 = vmul.f32 0.0052083335, %v1168_v28 }
 0x1bb   : > { %v996_v30 = vpop.xlane.xlu1 %995  ;;  %v1056_v31 = vpop.xlane.xlu0 %1055  ;;  %v1633_v28 = vmov 1966171168  }
 0x1bc   : > { %v1088_v3 = vadd.f32 %v996_v30, %v927_v26  ;;  %v1103_v32 = vadd.f32 %v1056_v31, %v942_v10  ;;  %1248 = vxpose.xlu0.b32.cont [8/16] (narrow) %v1200_v0, 8  ;;  %v1279_v0 = vlaneseq }
 0x1bd   : > { %1217 = vxpose.xlu1.b32.cont [9/16] (narrow) %v1185_v29, 8  ;;  %v1154_v35 = vld [vmem:[#allocation2 + $0x48] sm:$0xff]  ;;  %v1169_v36 = vld [vmem:[#allocation2 + $0xc0] sm:$0xff]  ;;  %v1277_v29 = vunpack.c.l.s4 %v1633_v28 }
 0x1be   : > { %1121 = vst.msk [vmem:[#allocation2 + $0x58] sm:$0xff] %vm256_vm2, %v1088_v3  ;;  %1136 = vst.msk [vmem:[#allocation2 + $0xd0] sm:$0xff] %vm256_vm2, %v1103_v32  ;;  %v1186_v37 = vmul.f32 0.0052083335, %v1154_v35  ;;  %v1201_v38 = vmul.f32 0.0052083335, %v1169_v36 }
 0x1bf   : > { %v1000_v39 = vpop.xlane.xlu1 %999  ;;  %v1060_v40 = vpop.xlane.xlu0 %1059  ;;  %v1278_v30 = vunpack.c.0.s8 %v1277_v29  ;;  %v1280_v31 = vshrl.u32 %v1279_v0, 7  ;;  %vm1293_vm4 = vcmp.lt.s32.totalorder %v1279_v0, 256 }
 0x1c0   : > { %v1089_v7 = vadd.f32 %v1000_v39, %v928_v33  ;;  %v1104_v41 = vadd.f32 %v1060_v40, %v943_v34  ;;  %1249 = vxpose.xlu0.b32.cont [9/16] (narrow) %v1201_v38, 8 }
 0x1c1   : > { %1218 = vxpose.xlu1.b32.cont [10/16] (narrow) %v1186_v37, 8  ;;  %v1155_v43 = vld [vmem:[#allocation2 + $0x50] sm:$0xff]  ;;  %v1170_v44 = vld [vmem:[#allocation2 + $0xc8] sm:$0xff]  ;;  %v1281_v32 = vsub.s32 %v1278_v30, %v1280_v31 }
 0x1c2   : > { %1122 = vst.msk [vmem:[#allocation2 + $0x60] sm:$0xff] %vm256_vm2, %v1089_v7  ;;  %1137 = vst.msk [vmem:[#allocation2 + $0xd8] sm:$0xff] %vm256_vm2, %v1104_v41  ;;  %v1187_v11 = vmul.f32 0.0052083335, %v1155_v43  ;;  %v1202_v45 = vmul.f32 0.0052083335, %v1170_v44 }
 0x1c3   : > { %v1004_v46 = vpop.xlane.xlu1 %1003  ;;  %v1064_v47 = vpop.xlane.xlu0 %1063 }
 0x1c4   : > { %v1090_v48 = vadd.f32 %v1004_v46, %v929_v4  ;;  %v1105_v49 = vadd.f32 %v1064_v47, %v944_v42  ;;  %1250 = vxpose.xlu0.b32.cont [10/16] (narrow) %v1202_v45, 8 }
 0x1c5   : > { %1219 = vxpose.xlu1.b32.cont [11/16] (narrow) %v1187_v11, 8  ;;  %v1156_v51 = vld [vmem:[#allocation2 + $0x58] sm:$0xff]  ;;  %v1171_v12 = vld [vmem:[#allocation2 + $0xd0] sm:$0xff] }
 0x1c6   : > { %1123 = vst.msk [vmem:[#allocation2 + $0x68] sm:$0xff] %vm256_vm2, %v1090_v48  ;;  %1138 = vst.msk [vmem:[#allocation2 + $0xe0] sm:$0xff] %vm256_vm2, %v1105_v49  ;;  %v1188_v1 = vmul.f32 0.0052083335, %v1156_v51  ;;  %v1203_v52 = vmul.f32 0.0052083335, %v1171_v12 }
 0x1c7   : > { %v1008_v53 = vpop.xlane.xlu1 %1007  ;;  %v1068_v54 = vpop.xlane.xlu0 %1067 }
 0x1c8   : > { %v1091_v55 = vadd.f32 %v1008_v53, %v930_v8  ;;  %v1106_v56 = vadd.f32 %v1068_v54, %v945_v50  ;;  %1251 = vxpose.xlu0.b32.cont [11/16] (narrow) %v1203_v52, 8 }
 0x1c9   : > { %1220 = vxpose.xlu1.b32.cont [12/16] (narrow) %v1188_v1, 8  ;;  %v1157_v59 = vld [vmem:[#allocation2 + $0x60] sm:$0xff]  ;;  %v1172_v60 = vld [vmem:[#allocation2 + $0xd8] sm:$0xff] }
 0x1ca   : > { %1124 = vst.msk [vmem:[#allocation2 + $0x70] sm:$0xff] %vm256_vm2, %v1091_v55  ;;  %1139 = vst.msk [vmem:[#allocation2 + $0xe8] sm:$0xff] %vm256_vm2, %v1106_v56  ;;  %v1189_v61 = vmul.f32 0.0052083335, %v1157_v59  ;;  %v1204_v2 = vmul.f32 0.0052083335, %v1172_v60 }
 0x1cb   : > { %v1012_v5 = vpop.xlane.xlu1 %1011  ;;  %v1072_v63 = vpop.xlane.xlu0 %1071 }
 0x1cc   : > { %v1092_v13 = vadd.f32 %v1012_v5, %v931_v57  ;;  %v1107_v14 = vadd.f32 %v1072_v63, %v946_v58  ;;  %1252 = vxpose.xlu0.b32.cont [12/16] (narrow) %v1204_v2, 8 }
 0x1cd   : > { %1221 = vxpose.xlu1.b32.cont [13/16] (narrow) %v1189_v61, 8  ;;  %v1158_v16 = vld [vmem:[#allocation2 + $0x68] sm:$0xff]  ;;  %v1173_v17 = vld [vmem:[#allocation2 + $0xe0] sm:$0xff] }
 0x1ce   : > { %1125 = vst.msk [vmem:[#allocation2 + $0x78] sm:$0xff] %vm256_vm2, %v1092_v13  ;;  %1140 = vst.msk [vmem:[#allocation2 + $0xf0] sm:$0xff] %vm256_vm2, %v1107_v14  ;;  %v1190_v18 = vmul.f32 0.0052083335, %v1158_v16  ;;  %v1205_v9 = vmul.f32 0.0052083335, %v1173_v17 }
 0x1cf   : > { %v1076_v19 = vpop.xlane.xlu0 %1075 }
 0x1d0   : > { %v1108_v20 = vadd.f32 %v1076_v19, %v947_v15  ;;  %1253 = vxpose.xlu0.b32.cont [13/16] (narrow) %v1205_v9, 8 }
 0x1d1   : > { %1222 = vxpose.xlu1.b32.cont [14/16] (narrow) %v1190_v18, 8  ;;  %v1159_v62 = vld [vmem:[#allocation2 + $0x70] sm:$0xff]  ;;  %v1174_v6 = vld [vmem:[#allocation2 + $0xe8] sm:$0xff] }
 0x1d2   : > { %1141 = vst.msk [vmem:[#allocation2 + $0xf8] sm:$0xff] %vm256_vm2, %v1108_v20  ;;  %v1191_v21 = vmul.f32 0.0052083335, %v1159_v62  ;;  %v1206_v22 = vmul.f32 0.0052083335, %v1174_v6 }
 0x1d4   : > { %1254 = vxpose.xlu0.b32.cont [14/16] (narrow) %v1206_v22, 8 }
 0x1d5   : > { %1223 = vxpose.xlu1.b32.cont [15/16] (narrow) %v1191_v21, 8  ;;  %v1160_v23 = vld [vmem:[#allocation2 + $0x78] sm:$0xff]  ;;  %v1175_v24 = vld [vmem:[#allocation2 + $0xf0] sm:$0xff] }
 0x1d6   : > { %v1192_v25 = vmul.f32 0.0052083335, %v1160_v23  ;;  %v1207_v26 = vmul.f32 0.0052083335, %v1175_v24 }
 0x1d8   : > { %1255 = vxpose.xlu0.b32.cont [15/16] (narrow) %v1207_v26, 8 }
 0x1d9   : > { %1224 = vxpose.xlu1.b32.end [16/16] (narrow) %v1192_v25, 8  ;;  %v1176_v10 = vld [vmem:[#allocation2 + $0xf8] sm:$0xff] }
 0x1da   : > { %v1208_v27 = vmul.f32 0.0052083335, %v1176_v10 }
 0x1dc   : > { %1256 = vxpose.xlu0.b32.end [16/16] (narrow) %v1208_v27, 8 }
 0x21d   : > { %v1225_v3 = vpop.trf.xlu1 }
 0x220   : > { %v1257_v33 = vpop.trf.xlu0 }
 0x221   : > { %v1275_v34 = vcombine.low %v1225_v3, %v1257_v33 }
 0x223   : > { %v1282_v35 = vrot.slane %v1275_v34, %v1281_v32 }
 0x225   : > { %v1289_v36 = vrot.slane %v1282_v35, %v1281_v32 }
 0x227   : > { %1295 = vst.msk [vmem:[%s227_s28] sm:$0x3] %vm1293_vm4, %v1289_v36 }
 0x228   : > { %1564 = shalt.err (!%p1561_p5)
}
 0x229   : > { %s1565_s10 = scalar_lea.hbm %s2046_s5, 32  ;;  %s1569_s19 = scalar_lea.hbm %s2096_s3, 64 }
 0x22a   : > { %p1566_p6 = scmp.ne.s32.totalorder %s2046_s5, %s1565_s10  ;;  %p1570_p10 = scmp.lt.u32.totalorder %s2046_s5, %s2096_s3 }
 0x22b   : > { %p1571_p11 = scmp.lt.u32.totalorder %s1569_s19, %s1565_s10  ;;  %p1573_p13 = scmp.lt.u32.totalorder %s1565_s10, %s2046_s5 }
 0x22c   : > { %p1567_p7 = pnand %p1566_p6, %p1695_p4 }
 0x22d   : > { %p1572_p12 = por %p1571_p11, %p1570_p10 }
 0x22e   : > { %p1568_p9 = pneg %p1567_p7 }
 0x22f   : > { %p1574_p0 = por %p1573_p13, %p1572_p12 }
 0x231   : > { %p1575_p1 = pnand %p1574_p0, %p1568_p9 }
 0x233   : > { %1578 = shalt.err (!%p1575_p1)
}
 0x234   : > { %1475 = dma.vmem_to_hbm [thread:$0]  (%p1695_p4), %s2048_s29, 32, %s2046_s5, %s1297_s6  }
 0x235 PF: > { %p1481_p2 = scmp.ge.s32.totalorder %s1629_s17, 2  ;;  %s1325_s26 = sand.u32 1, %s1609_s12  }
 0x236   : > { %s1326_s27 = scalar_lea.sflag [#allocation4], %s1325_s26 }
 0x237   : > { %p1478_p3 = pnand %p1481_p2, %p1702_p8 }
 0x239   : > { %1604 = dma.done.wait (!%p1478_p3), %s1326_s27, 32  }
 0x23a   : > { %1606 = vsyncadd (!%p1478_p3), %s1326_s27, 4294967264  ;;  %s16_s17 = sadd.s32 1, %s1629_s17   ;;  %s2099_s12 = smov %s1613_s13 }
 0x23b   : > { %p13_p5 = scmp.ge.s32.totalorder %s16_s17, 4   ;;  %s2100_s13 = smov %s1617_s14 }
 0x23c   : > { %s2101_s14 = smov %s1708_s25  ;;  %s2102_s15 = smov %s1625_s16 }
 0x23d   : > { %s2103_s16 = smov %s2105_s20  ;;  %15 = sbr.rel (!%p13_p5) target bundleno = 4 (0x4), region = 81 }
 0x244   :  { %1331 = vsyncpa [#allocation4], 1 }
 0x245   :  { %1333 = vsyncpa [#allocation4 + $0x1], 1 }

</bundles_post_ra>
